<compile_context>
chip_gen: v7x
topology: tpu7x:2x2x1
jax: 0.10.0
libtpu: 0.0.40
codegen_flags: <defaults>
</compile_context>

<pallas_src>
import functools

import jax
import jax.numpy as jnp
from jax import lax
from jax.experimental import pallas as pl
from jax.experimental.pallas import tpu as pltpu

_LANES = 128
_TARGET_STEP_BYTES = 4 * 1024 * 1024    # ~2-8 MiB HBM traffic per grid step
_VMEM_WORKING_SET = 24 * 1024 * 1024    # double-buffered blocks + f32 temps
_VMEM_LIMIT_BYTES = 48 * 1024 * 1024    # scoped VMEM limit, safe v5e/v6e/v7x


def _per_pixel_focal(x, t, alpha, gamma):
    """Per-pixel focal loss on a sublane/lane-dense tile.

    x: (1, C, TM, 128) float32 logits
    t: (1, 1, TM, 128) int32 class indices
    returns (1, 1, TM, 128) float32 focal loss
    """
    # Numerically-stable softmax pieces; reductions over axis=1 (C) are plain
    # per-vreg VPU max/adds (C is neither the lane nor the sublane axis).
    m = jnp.max(x, axis=1, keepdims=True)                        # (1,1,TM,128)
    e = jnp.exp(x - m)                                           # C exps / px
    sumexp = jnp.sum(e, axis=1, keepdims=True)                   # (1,1,TM,128)

    # One-hot gather of the true class via a class-axis iota (masked VPU sum).
    class_iota = lax.broadcasted_iota(jnp.int32, x.shape, dimension=1)
    onehot = class_iota == t
    true_logit = jnp.sum(jnp.where(onehot, x, 0.0), axis=1, keepdims=True)
    p_num = jnp.sum(jnp.where(onehot, e, 0.0), axis=1, keepdims=True)

    # cross_entropy(reduction='none'): ce = logsumexp(x) - x[target]; clamp at
    # 0 so rounding can't push pt above 1.
    # NOTE: out-of-range targets give an all-false one-hot (loss = a*(1-pt)^g*lse)
    # instead of erroring like torch.nn.functional.cross_entropy would.
    ce = jnp.maximum(jnp.log(sumexp) + m - true_logit, 0.0)
    # pt = softmax prob of the true class, reusing the exponentials already
    # computed for the LSE — no second exp(-ce) EUP pass.  (approx=True would
    # shave the Newton step at ~1e-3 relative cost; keep exact for tight tests.)
    pt = p_num * pl.reciprocal(sumexp, approx=False)
    one_minus_pt = jnp.maximum(1.0 - pt, 0.0)

    if float(gamma) == 2.0:                    # default: a single VPU multiply
        mod = one_minus_pt * one_minus_pt
    elif float(gamma).is_integer() and gamma >= 0:
        mod = one_minus_pt ** int(gamma)       # lax.integer_pow -> multiplies
    else:
        mod = jnp.power(one_minus_pt, gamma)

    return alpha * mod * ce


def _focal_loss_map_kernel(x_ref, t_ref, o_ref, *, alpha, gamma):
    """reduction='none': write the per-pixel loss tile."""
    x = x_ref[...].astype(jnp.float32)
    t = t_ref[...].astype(jnp.int32)
    o_ref[...] = _per_pixel_focal(x, t, alpha, gamma).astype(o_ref.dtype)


def _focal_loss_sum_kernel(x_ref, t_ref, acc_ref, *, alpha, gamma,
                           tile_rows, hw, needs_mask):
    """reduction='mean'/'sum': accumulate per-batch partial sums in a tiny
    resident (1,1,128) block (same output block across the pixel-tile axis)."""
    @pl.when(pl.program_id(1) == 0)
    def _():
        acc_ref[...] = jnp.zeros_like(acc_ref)

    x = x_ref[...].astype(jnp.float32)
    t = t_ref[...].astype(jnp.int32)
    fl = _per_pixel_focal(x, t, alpha, gamma)                   # (1,1,TM,128)

    if needs_mask:
        # Zero out padded lane-tail pixels and ragged-row garbage before summing.
        j = pl.program_id(1)
        row = lax.broadcasted_iota(jnp.int32, fl.shape, 2)
        lane = lax.broadcasted_iota(jnp.int32, fl.shape, 3)
        pix = (j * tile_rows + row) * _LANES + lane
        fl = jnp.where(pix < hw, fl, 0.0)

    acc_ref[...] += jnp.sum(fl, axis=2)                          # (1,1,128)


def _pick_tile_rows(rows, c, logit_bytes, tgt_bytes,
                    target_step_bytes=_TARGET_STEP_BYTES,
                    vmem_working_set=_VMEM_WORKING_SET):
    """Rows of 128 pixels per tile: multiple of 8 (or the full extent), sized
    for multi-MiB per-step HBM traffic under an honest VMEM budget (dense
    blocks, double-buffered, plus in-kernel f32 temporaries)."""
    if rows <= 8:
        return rows
    hbm_per_row = _LANES * (c * logit_bytes + tgt_bytes + 4)          # in+out
    vmem_per_row = 2 * hbm_per_row + _LANES * 4 * (3 * c + 12)        # + temps
    tm_budget = max(8, vmem_working_set // vmem_per_row)
    tm_target = max(8, -(-target_step_bytes // hbm_per_row))
    tm = min(tm_budget, tm_target, rows)
    return max(8, (tm // 8) * 8)


def focal_loss(inputs, targets, *, alpha=0.25, gamma=2.0, reduction="none",
               tile_rows=None):
    """Pallas implementation of FocalLoss.forward.

    inputs:  (B, C, H, W) float logits (NCHW, native dtype kept end-to-end)
    targets: (B, H, W) integer class indices
    returns: (B, H, W) focal loss for 'none', a scalar for 'mean'/'sum'.
    """
    B, C, H, W = inputs.shape
    HW = H * W

    # Free, contiguous reshapes — no transpose, no extra HBM pass.
    x = inputs.reshape(B, C, HW)
    t = targets.reshape(B, 1, HW)
    if t.dtype not in (jnp.int8, jnp.uint8, jnp.int32, jnp.uint32):
        t = t.astype(jnp.int32)     # only when the incoming dtype is unusable

    # Pixel axis -> (rows, 128): sublane- and lane-dense blocks.  Free when
    # HW % 128 == 0 (the common case); otherwise pad the lane tail only.
    rows = -(-HW // _LANES)
    hw_pad = rows * _LANES
    if hw_pad != HW:
        # TODO(synk): a ragged lane tail could avoid this small pad with a
        # second tiny pallas_call; padded pixels are masked/sliced below.
        x = jnp.pad(x, ((0, 0), (0, 0), (0, hw_pad - HW)))
        t = jnp.pad(t, ((0, 0), (0, 0), (0, hw_pad - HW)))
    x = x.reshape(B, C, rows, _LANES)
    t = t.reshape(B, 1, rows, _LANES)

    tm = tile_rows or _pick_tile_rows(rows, C, x.dtype.itemsize, t.dtype.itemsize)
    n_tiles = -(-rows // tm)

    in_specs = [
        pl.BlockSpec((1, C, tm, _LANES), lambda b, j: (b, 0, j, 0)),
        pl.BlockSpec((1, 1, tm, _LANES), lambda b, j: (b, 0, j, 0)),
    ]

    if reduction in ("mean", "sum"):
        acc = pl.pallas_call(
            functools.partial(_focal_loss_sum_kernel, alpha=float(alpha),
                              gamma=float(gamma), tile_rows=tm, hw=HW,
                              needs_mask=(n_tiles * tm * _LANES != HW)),
            out_shape=jax.ShapeDtypeStruct((B, 1, _LANES), jnp.float32),
            grid_spec=pltpu.PrefetchScalarGridSpec(
                num_scalar_prefetch=0,
                grid=(B, n_tiles),
                in_specs=in_specs,
                out_specs=pl.BlockSpec((1, 1, _LANES), lambda b, j: (b, 0, 0)),
            ),
            compiler_params=pltpu.CompilerParams(
                dimension_semantics=("parallel", "arbitrary"),
                vmem_limit_bytes=_VMEM_LIMIT_BYTES,
            ),
        )(x, t)
        total = jnp.sum(acc)
        return total / (B * HW) if reduction == "mean" else total

    # reduction == 'none' (and any other value, matching the module's else).
    # Output kept float32; emitting inputs.dtype would halve writeback traffic.
    out = pl.pallas_call(
        functools.partial(_focal_loss_map_kernel,
                          alpha=float(alpha), gamma=float(gamma)),
        out_shape=jax.ShapeDtypeStruct((B, 1, rows, _LANES), jnp.float32),
        grid_spec=pltpu.PrefetchScalarGridSpec(
            num_scalar_prefetch=0,
            grid=(B, n_tiles),
            in_specs=in_specs,
            out_specs=pl.BlockSpec((1, 1, tm, _LANES), lambda b, j: (b, 0, j, 0)),
        ),
        compiler_params=pltpu.CompilerParams(
            dimension_semantics=("parallel", "parallel"),
            vmem_limit_bytes=_VMEM_LIMIT_BYTES,
        ),
    )(x, t)

    fl = out.reshape(B, hw_pad)
    if hw_pad != HW:
        fl = fl[:, :HW]
    return fl.reshape(B, H, W)
    # TODO(synk): the PyTorch module's `debug=True` branch (prints / matplotlib
    # heatmaps) is host-side introspection with no Pallas equivalent.


def _focal_loss_ref(inputs, targets, alpha=0.25, gamma=2.0):
    """Pure-JAX reference (mirrors torch.nn.functional.cross_entropy path)."""
    logp = jax.nn.log_softmax(inputs.astype(jnp.float32), axis=1)   # (B,C,H,W)
    onehot = jax.nn.one_hot(targets, inputs.shape[1], axis=1, dtype=jnp.float32)
    ce = -jnp.sum(logp * onehot, axis=1)                             # (B,H,W)
    pt = jnp.exp(-ce)
    return alpha * (1.0 - pt) ** gamma * ce


if __name__ == "__main__":
    key = jax.random.PRNGKey(0)
    k1, k2, k3, k4 = jax.random.split(key, 4)

    # Shapes consistent with the module: (B, C, H, W) logits, (B, H, W) targets.
    B, C, H, W = 2, 4, 16, 16
    logits = jax.random.normal(k1, (B, C, H, W), dtype=jnp.float32)
    targets = jax.random.randint(k2, (B, H, W), 0, C, dtype=jnp.int32)

    out = focal_loss(logits, targets, alpha=0.25, gamma=2.0, reduction="none")
    out = jax.block_until_ready(out)
    ref = _focal_loss_ref(logits, targets, 0.25, 2.0)
    assert out.shape == (B, H, W)
    assert jnp.allclose(out, ref, atol=1e-5, rtol=1e-4), "per-pixel mismatch"

    # In-kernel reductions.
    mean_out = jax.block_until_ready(focal_loss(logits, targets, reduction="mean"))
    sum_out = jax.block_until_ready(focal_loss(logits, targets, reduction="sum"))
    assert jnp.allclose(mean_out, ref.mean(), atol=1e-5, rtol=1e-5), "mean mismatch"
    assert jnp.allclose(sum_out, ref.sum(), atol=1e-4, rtol=1e-5), "sum mismatch"

    # Ragged case (H*W not a multiple of 128) exercises the masked lane tail.
    Hr, Wr = 10, 10
    logits_r = jax.random.normal(k3, (B, C, Hr, Wr), dtype=jnp.float32)
    targets_r = jax.random.randint(k4, (B, Hr, Wr), 0, C, dtype=jnp.int32)
    out_r = jax.block_until_ready(focal_loss(logits_r, targets_r, reduction="none"))
    ref_r = _focal_loss_ref(logits_r, targets_r, 0.25, 2.0)
    assert jnp.allclose(out_r, ref_r, atol=1e-5, rtol=1e-4), "ragged mismatch"
    sum_r = jax.block_until_ready(focal_loss(logits_r, targets_r, reduction="sum"))
    assert jnp.allclose(sum_r, ref_r.sum(), atol=1e-4, rtol=1e-5), "ragged sum mismatch"

    print("KERNEL_OK")
</pallas_src>

<mosaic_0001>
module attributes {stable_mosaic.version = 11 : i64} {
  func.func @_focal_loss_map_kernel(%arg0: i32, %arg1: i32, %arg2: memref<1x4x2x128xf32, #tpu.memory_space<vmem>>, %arg3: memref<1x1x2x128xi32, #tpu.memory_space<vmem>>, %arg4: memref<1x1x2x128xf32, #tpu.memory_space<vmem>>) attributes {dimension_semantics = [#tpu.dimension_semantics<parallel>, #tpu.dimension_semantics<parallel>], iteration_bounds = array<i64: 2, 1>, scalar_prefetch = 0 : i64, scratch_operands = 0 : i64, tpu.core_type = #tpu.core_type<tc>, window_params = [{transform_indices = @transform_0, window_bounds = array<i64: 1, 4, 2, 128>}, {transform_indices = @transform_1, window_bounds = array<i64: 1, 1, 2, 128>}, {transform_indices = @transform_2, window_bounds = array<i64: 1, 1, 2, 128>}]} {
    %c0 = arith.constant 0 : index
    %c0_0 = arith.constant 0 : index
    %c0_1 = arith.constant 0 : index
    %c0_2 = arith.constant 0 : index
    %0 = vector.load %arg2[%c0, %c0_0, %c0_1, %c0_2] : memref<1x4x2x128xf32, #tpu.memory_space<vmem>>, vector<1x4x2x128xf32>
    %c0_3 = arith.constant 0 : index
    %c0_4 = arith.constant 0 : index
    %c0_5 = arith.constant 0 : index
    %c0_6 = arith.constant 0 : index
    %1 = vector.load %arg3[%c0_3, %c0_4, %c0_5, %c0_6] : memref<1x1x2x128xi32, #tpu.memory_space<vmem>>, vector<1x1x2x128xi32>
    %cst = arith.constant dense<0xFF800000> : vector<1x2x128xf32>
    %2 = vector.multi_reduction <maximumf>, %0, %cst [1] : vector<1x4x2x128xf32> to vector<1x2x128xf32>
    %3 = vector.shape_cast %2 : vector<1x2x128xf32> to vector<1x1x2x128xf32>
    %4 = vector.broadcast %3 : vector<1x1x2x128xf32> to vector<1x4x2x128xf32>
    %5 = arith.subf %0, %4 : vector<1x4x2x128xf32>
    %6 = math.exp %5 : vector<1x4x2x128xf32>
    %cst_7 = arith.constant dense<0.000000e+00> : vector<1x2x128xf32>
    %7 = vector.multi_reduction <add>, %6, %cst_7 [1] : vector<1x4x2x128xf32> to vector<1x2x128xf32>
    %8 = vector.shape_cast %7 : vector<1x2x128xf32> to vector<1x1x2x128xf32>
    %9 = tpu.iota {dimensions = array<i32: 1>} : vector<1x4x2x128xi32>
    %10 = vector.broadcast %1 : vector<1x1x2x128xi32> to vector<1x4x2x128xi32>
    %11 = arith.cmpi eq, %9, %10 : vector<1x4x2x128xi32>
    %cst_8 = arith.constant 0.000000e+00 : f32
    %12 = vector.broadcast %cst_8 : f32 to vector<1x4x2x128xf32>
    %13 = arith.select %11, %0, %12 : vector<1x4x2x128xi1>, vector<1x4x2x128xf32>
    %cst_9 = arith.constant dense<0.000000e+00> : vector<1x2x128xf32>
    %14 = vector.multi_reduction <add>, %13, %cst_9 [1] : vector<1x4x2x128xf32> to vector<1x2x128xf32>
    %15 = vector.shape_cast %14 : vector<1x2x128xf32> to vector<1x1x2x128xf32>
    %cst_10 = arith.constant 0.000000e+00 : f32
    %16 = vector.broadcast %cst_10 : f32 to vector<1x4x2x128xf32>
    %17 = arith.select %11, %6, %16 : vector<1x4x2x128xi1>, vector<1x4x2x128xf32>
    %cst_11 = arith.constant dense<0.000000e+00> : vector<1x2x128xf32>
    %18 = vector.multi_reduction <add>, %17, %cst_11 [1] : vector<1x4x2x128xf32> to vector<1x2x128xf32>
    %19 = vector.shape_cast %18 : vector<1x2x128xf32> to vector<1x1x2x128xf32>
    %20 = math.log %8 : vector<1x1x2x128xf32>
    %21 = arith.addf %20, %3 : vector<1x1x2x128xf32>
    %22 = arith.subf %21, %15 : vector<1x1x2x128xf32>
    %cst_12 = arith.constant 0.000000e+00 : f32
    %23 = vector.broadcast %cst_12 : f32 to vector<1x1x2x128xf32>
    %24 = arith.maximumf %22, %23 : vector<1x1x2x128xf32>
    %25 = tpu.reciprocal %8 : vector<1x1x2x128xf32> -> vector<1x1x2x128xf32>
    %26 = arith.mulf %19, %25 : vector<1x1x2x128xf32>
    %cst_13 = arith.constant 1.000000e+00 : f32
    %27 = vector.broadcast %cst_13 : f32 to vector<1x1x2x128xf32>
    %28 = arith.subf %27, %26 : vector<1x1x2x128xf32>
    %cst_14 = arith.constant 0.000000e+00 : f32
    %29 = vector.broadcast %cst_14 : f32 to vector<1x1x2x128xf32>
    %30 = arith.maximumf %28, %29 : vector<1x1x2x128xf32>
    %31 = arith.mulf %30, %30 : vector<1x1x2x128xf32>
    %cst_15 = arith.constant 2.500000e-01 : f32
    %32 = vector.broadcast %cst_15 : f32 to vector<1x1x2x128xf32>
    %33 = arith.mulf %32, %31 : vector<1x1x2x128xf32>
    %34 = arith.mulf %33, %24 : vector<1x1x2x128xf32>
    %c0_16 = arith.constant 0 : index
    %c0_17 = arith.constant 0 : index
    %c0_18 = arith.constant 0 : index
    %c0_19 = arith.constant 0 : index
    %35 = vector.load %arg4[%c0_16, %c0_17, %c0_18, %c0_19] : memref<1x1x2x128xf32, #tpu.memory_space<vmem>>, vector<1x1x2x128xf32>
    tpu.vector_store %arg4[%c0_16, %c0_17, %c0_18, %c0_19], %34 {strides = array<i32>} : memref<1x1x2x128xf32, #tpu.memory_space<vmem>>, vector<1x1x2x128xf32>,
    return
  }
  func.func @transform_0(%arg0: i32, %arg1: i32) -> (i32, i32, i32, i32) {
    %c0_i32 = arith.constant 0 : i32
    %c0_i32_0 = arith.constant 0 : i32
    %c0_i32_1 = arith.constant 0 : i32
    return %arg0, %c0_i32, %arg1, %c0_i32_0 : i32, i32, i32, i32
  }
  func.func @transform_1(%arg0: i32, %arg1: i32) -> (i32, i32, i32, i32) {
    %c0_i32 = arith.constant 0 : i32
    %c0_i32_0 = arith.constant 0 : i32
    %c0_i32_1 = arith.constant 0 : i32
    return %arg0, %c0_i32, %arg1, %c0_i32_0 : i32, i32, i32, i32
  }
  func.func @transform_2(%arg0: i32, %arg1: i32) -> (i32, i32, i32, i32) {
    %c0_i32 = arith.constant 0 : i32
    %c0_i32_0 = arith.constant 0 : i32
    %c0_i32_1 = arith.constant 0 : i32
    return %arg0, %c0_i32, %arg1, %c0_i32_0 : i32, i32, i32, i32
  }
}

</mosaic_0001>

<bundles_post_ra>
// kernel: tpu_custom_call.1
= control target key start
LH: loop header
LB: loop body
LE: loop exit
PB: predicated region body
PF: predicated region fallthrough
CT: control target
= control target key end

     0   :  { %7 = vsyncpa [#allocation3], 0  ;;  %s912_s0 = inlined_call_operand.hbm [shape: f32[2,4,2,128], index: 0, kind: input, shape index: {}]   ;;  %s913_s1 = inlined_call_operand.hbm [shape: s32[2,1,2,128], index: 1, kind: input, shape index: {}]   ;;  %s914_s2 = inlined_call_operand.hbm [shape: f32[2,1,2,128], index: 2, kind: output, shape index: {}]  }
   0x1   :  { %9 = vsyncpa [#allocation3 + $0x1], 0 }
   0x2   :  { %10 = vsyncpa [#allocation6], 0 }
   0x3   :  { %12 = vsyncpa [#allocation6 + $0x1], 0 }
   0x4   :  { %13 = vsyncpa [#allocation4], 0 }
   0x5   :  { %15 = vsyncpa [#allocation4 + $0x1], 0  ;;  %s677_s9 = smov 0   ;;  %s679_s10 = smov 0  }
   0x6   :  { %s681_s11 = smov 0   ;;  %s683_s12 = smov 0  }
   0x7   :  { %s685_s13 = smov 0   ;;  %s687_s14 = smov 0  }
   0x8 LB: > { %s410_s15 = sadd.s32 4294967295, %s655_s14   ;;  %s411_s16 = sadd.s32 4294967294, %s655_s14   ;;  %s655_s14 = sphi %s687_s14, %s21_s14   ;;  %s651_s13 = sphi %s685_s13, %s933_s13   ;;  %s647_s12 = sphi %s683_s12, %s932_s12   ;;  %s643_s11 = sphi %s681_s11, %s931_s11   ;;  %s639_s10 = sphi %s679_s10, %s930_s10   ;;  %s635_s9 = sphi %s677_s9, %s929_s9  }
   0x9   : > { %s33_s17 = sadd.s32 1, %s651_s13  ;;  %s42_s18 = sadd.s32 1, %s643_s11 }
   0xa   : > { %p35_p0 = scmp.ge.s32.totalorder %s33_s17, 2  ;;  %p49_p1 = scmp.ne.s32.totalorder %s643_s11, %s639_s10 }
   0xb   : > { %p50_p2 = scmp.eq.s32.totalorder %s655_s14, 0  ;;  %p55_p3 = scmp.ne.s32.totalorder %s639_s10, %s635_s9 }
   0xc   : > { %s935_s17 = smov (%p35_p0, %s33_s17), 0  ;;  %p56_p5 = scmp.eq.s32.totalorder %s410_s15, 0 }
   0xd   : > { %p718_p4 = por %p50_p2, %p49_p1  ;;  %s37_s20 = ssub.s32 %s651_s13, %s935_s17 }
   0xe   : > { %p109_p6 = scmp.eq.s32.totalorder %s410_s15, 1  ;;  %p40_p7 = scmp.eq.s32.totalorder %s37_s20, 0 }
   0xf   : > { %p724_p8 = por %p56_p5, %p55_p3  ;;  %p115_p10 = scmp.eq.s32.totalorder %s411_s16, 1 }
  0x10   : > { %p728_p9 = por %p109_p6, %p49_p1  ;;  %p445_p13 = scmp.lt.s32.totalorder %s655_s14, 2 }
  0x11   : > { %s918_s21 = scalar_select %p724_p8, 1, 0 }
  0x12   : > { %s919_s22 = scalar_select %p728_p9, 1, 0 }
  0x13   : > { %s733_s23 = scalar_select %p40_p7, %s643_s11, %s42_s18  }
  0x14   : > { %p735_p11 = por %p115_p10, %p55_p3  ;;  %s742_s25 = sand.u32 1, %s643_s11  }
  0x15   : > { %s414_s26 = sshll.u32 %s742_s25, 3  ;;  %s427_s27 = sshll.u32 %s651_s13, 7 }
  0x16   : > { %s920_s24 = scalar_select %p735_p11, 1, 0 }
  0x17   : > { %s749_s30 = scalar_lea.hbm %s912_s0, %s427_s27  ;;  %s139_s3 = scalar_lea.vmem [#allocation2], %s414_s26 }
  0x18   : > { %s147_s4 = sshll.u32 %s139_s3, 4  ;;  %p755_p0 = pnand %p445_p13, %p718_p4  ;;  %s751_s4 = int_to_ptr.vmem [resolvable:$true] %s147_s4 }
  0x19   : > { %s136_s6 = scalar_lea.sflag [#allocation3], %s742_s25  ;;  %s509_s7 = scalar_lea.hbm %s749_s30, 128 }
  0x1a   : > { %p510_p2 = scmp.ne.s32.totalorder %s749_s30, %s509_s7  ;;  %p511_p3 = pneg %p755_p0 }
  0x1b   : > { %s514_s16 = scalar_lea.hbm %s912_s0, 256  ;;  %p515_p4 = scmp.lt.u32.totalorder %s749_s30, %s912_s0 }
  0x1c   : > { %p512_p5 = pnand %p511_p3, %p510_p2  ;;  %p516_p7 = scmp.lt.u32.totalorder %s514_s16, %s509_s7 }
  0x1d   : > { %p518_p13 = scmp.lt.u32.totalorder %s509_s7, %s749_s30 }
  0x1e   : > { %p513_p6 = pneg %p512_p5  ;;  %p517_p10 = por %p516_p7, %p515_p4 }
  0x20   : > { %p519_p12 = por %p518_p13, %p517_p10 }
  0x22   : > { %p520_p1 = pnand %p519_p12, %p513_p6 }
  0x24   : > { %523 = shalt.err (!%p520_p1)
}
  0x25   : > { %s524_s20 = scalar_lea.vmem %s751_s4, 128  ;;  %s657_s26 = smov [#allocation2]  }
  0x26   : > { %p525_p2 = scmp.ne.s32.totalorder %s751_s4, %s524_s20  ;;  %s529_s27 = sshll.u32 %s657_s26, 4  ;;  %s530_s27 = int_to_ptr.vmem [resolvable:$false] %s529_s27 }
  0x27   : > { %s531_s28 = scalar_lea.vmem %s530_s27, 256  ;;  %p532_p9 = scmp.lt.s32.totalorder %s751_s4, %s530_s27 }
  0x28   : > { %p527_p5 = pnand %p525_p2, %p511_p3  ;;  %p533_p4 = scmp.lt.s32.totalorder %s531_s28, %s524_s20 }
  0x2a   : > { %p528_p11 = pneg %p527_p5  ;;  %p534_p7 = por %p533_p4, %p532_p9 }
  0x2c   : > { %p535_p10 = pnand %p534_p7, %p528_p11 }
  0x2e   : > { %538 = shalt.err (!%p535_p10)
}
  0x2f   : > { %s658_s29 = smov 32   ;;  %s659_s3 = smov 2  }
  0x30   : > { %437 = dma.hbm_to_vmem [thread:$0]  (!%p755_p0), %s749_s30, 128, %s751_s4, %s136_s6, %s658_s29, %s658_s29, %s659_s3  }
  0x31   : > { %p174_p12 = scmp.lt.s32.totalorder %s655_s14, 3  ;;  %s417_s7 = sshll.u32 %s742_s25, 1 }
  0x32   : > { %s418_s8 = sshll.u32 %s651_s13, 5  ;;  %p922_p9 = scmp.ge.s32.totalorder %s655_s14, 1 }
  0x33   : > { %s800_s19 = scalar_lea.hbm %s913_s1, %s418_s8  ;;  %s161_s20 = scalar_lea.vmem [#allocation5], %s417_s7 }
  0x34   : > { %p793_p11 = pnand %p922_p9, %p174_p12  ;;  %s169_s26 = sshll.u32 %s161_s20, 4  ;;  %s170_s26 = int_to_ptr.vmem [resolvable:$true] %s169_s26 }
  0x35   : > { %s158_s30 = scalar_lea.sflag [#allocation6], %s742_s25  ;;  %s539_s4 = scalar_lea.hbm %s800_s19, 32 }
  0x36   : > { %s923_s15 = scalar_select %p793_p11, 1, 0 }
  0x37   : > { %p540_p1 = scmp.ne.s32.totalorder %s800_s19, %s539_s4  ;;  %s544_s28 = scalar_lea.hbm %s913_s1, 64 }
  0x38   : > { %p545_p2 = scmp.lt.u32.totalorder %s800_s19, %s913_s1  ;;  %p546_p5 = scmp.lt.u32.totalorder %s544_s28, %s539_s4 }
  0x39   : > { %p542_p6 = pnand %p540_p1, %p511_p3  ;;  %p548_p7 = scmp.lt.u32.totalorder %s539_s4, %s800_s19 }
  0x3a   : > { %p547_p4 = por %p546_p5, %p545_p2 }
  0x3b   : > { %p543_p13 = pneg %p542_p6 }
  0x3c   : > { %p549_p10 = por %p548_p7, %p547_p4 }
  0x3e   : > { %p550_p12 = pnand %p549_p10, %p543_p13 }
  0x40   : > { %553 = shalt.err (!%p550_p12)
}
  0x41   : > { %s554_s25 = scalar_lea.vmem %s170_s26, 32  ;;  %s660_s7 = smov [#allocation5]  }
  0x42   : > { %p555_p9 = scmp.ne.s32.totalorder %s170_s26, %s554_s25  ;;  %s559_s8 = sshll.u32 %s660_s7, 4  ;;  %s560_s8 = int_to_ptr.vmem [resolvable:$false] %s559_s8 }
  0x43   : > { %s561_s16 = scalar_lea.vmem %s560_s8, 64  ;;  %p562_p8 = scmp.lt.s32.totalorder %s170_s26, %s560_s8 }
  0x44   : > { %p557_p1 = pnand %p555_p9, %p511_p3  ;;  %p563_p11 = scmp.lt.s32.totalorder %s561_s16, %s554_s25 }
  0x46   : > { %p558_p6 = pneg %p557_p1  ;;  %p564_p2 = por %p563_p11, %p562_p8 }
  0x48   : > { %p565_p5 = pnand %p564_p2, %p558_p6 }
  0x4a   : > { %568 = shalt.err (!%p565_p5)
}
  0x4b   : > { %440 = dma.hbm_to_vmem [thread:$0]  (!%p755_p0), %s800_s19, 32, %s170_s26, %s158_s30  }
  0x4c   : > { %p924_p13 = scmp.ne.s32.totalorder %s923_s15, 0 }
  0x4d   : > { %s825_s18 = sand.u32 (!%p924_p13), 1, %s639_s10   ;;  %p925_p3 = scmp.ne.s32.totalorder (!%p924_p13), %s918_s21, 0 }
  0x4e   : > { %178 = sbr.rel (%p924_p13) target bundleno = 157 (0x9d), region = 28  ;;  %s420_s20 = sshll.u32 (!%p924_p13), %s825_s18, 3 }
  0x4f   : > { %s181_s4 = scalar_lea.sflag (!%p924_p13), [#allocation3], %s825_s18  ;;  %s184_s6 = scalar_lea.vmem (!%p924_p13), [#allocation2], %s420_s20 }
  0x55   : > { %622 = dma.done.wait (%p925_p3), %s181_s4, 128  }
  0x56   : > { %624 = vsyncadd (%p925_p3), %s181_s4, 4294967168  ;;  %s421_s5 = sshll.u32 %s825_s18, 1  ;;  %s190_s15 = scalar_lea.sflag [#allocation6], %s825_s18 }
  0x57   : > { %s193_s19 = scalar_lea.vmem [#allocation5], %s421_s5 }
  0x58   : > { %626 = dma.done.wait (%p925_p3), %s190_s15, 32  }
  0x59   : > { %628 = vsyncadd (%p925_p3), %s190_s15, 4294967264  ;;  %vm224_vm0 = vcmask 1041408   ;;  %v219_v0 = vld [vmem:[%s184_s6] sm:$0x3]  ;;  %v220_v1 = vld [vmem:[%s184_s6 + $0x2] sm:$0x3] }
  0x5a   : > { %v221_v2 = vld [vmem:[%s184_s6 + $0x4] sm:$0x3]  ;;  %v222_v3 = vld [vmem:[%s184_s6 + $0x6] sm:$0x3]  ;;  %v225_v4 = vsel %vm224_vm0, %v219_v0, -inf  ;;  %v226_v5 = vsel %vm224_vm0, %v220_v1, -inf }
  0x5b   : > { %v227_v6 = vsel %vm224_vm0, %v221_v2, -inf  ;;  %v228_v7 = vsel %vm224_vm0, %v222_v3, -inf  ;;  %v229_v8 = vmax.f32 %v225_v4, %v226_v5  ;;  %v223_v19 = vld [vmem:[%s193_s19] sm:$0x3]  ;;  %s218_s21 = scalar_lea.vmem [#allocation7], %s421_s5  ;;  %s424_s30 = sshll.u32 %s647_s12, 5 }
  0x5c   : > { %v230_v9 = vmax.f32 %v227_v6, %v228_v7  ;;  %vm251_vm1 = vcmp.eq.s32.totalorder %v223_v19, 0  ;;  %vm252_vm2 = vcmp.eq.s32.totalorder %v223_v19, 1  ;;  %vm253_vm3 = vcmp.eq.s32.totalorder %v223_v19, 2  ;;  %s305_s26 = sshll.u32 %s218_s21, 4  ;;  %s865_s29 = scalar_lea.hbm %s914_s2, %s424_s30  ;;  %s860_s26 = int_to_ptr.vmem [resolvable:$true] %s305_s26 }
  0x5d   : > { %v255_v32 = vsel %vm251_vm1, %v219_v0, 0.0  ;;  %v256_v33 = vsel %vm252_vm2, %v220_v1, 0.0  ;;  %vm254_vm4 = vcmp.eq.s32.totalorder %v223_v19, 3  ;;  %v257_v41 = vsel %vm253_vm3, %v221_v2, 0.0  ;;  %s291_s3 = scalar_lea.sflag [#allocation4], %s825_s18  ;;  %s569_s25 = scalar_lea.vmem %s860_s26, 32 }
  0x5e   : > { %v231_v10 = vmax.f32 %v229_v8, %v230_v9  ;;  %v259_v38 = vsel %vm224_vm0, %v255_v32, 0.0  ;;  %v260_v39 = vsel %vm224_vm0, %v256_v33, 0.0  ;;  %v262_v45 = vsel %vm224_vm0, %v257_v41, 0.0  ;;  %p570_p8 = scmp.ne.s32.totalorder %s860_s26, %s569_s25  ;;  %p926_p0 = scmp.ne.s32.totalorder %s919_s22, 0 }
  0x5f   : > { %v261_v44 = vadd.f32 %v260_v39, %v259_v38  ;;  %v258_v47 = vsel %vm254_vm4, %v222_v3, 0.0  ;;  %s661_s12 = smov [#allocation7]  }
  0x60   : > { %v232_v11 = vsub.f32 %v219_v0, %v231_v10  ;;  %v233_v12 = vsub.f32 %v220_v1, %v231_v10  ;;  %v234_v13 = vsub.f32 %v221_v2, %v231_v10  ;;  %v235_v14 = vsub.f32 %v222_v3, %v231_v10  ;;  %p571_p11 = pnand %p570_p8, %p926_p0  ;;  %s573_s7 = sshll.u32 %s661_s12, 4  ;;  %s574_s7 = int_to_ptr.vmem [resolvable:$false] %s573_s7 }
  0x61   : > { %v263_v49 = vadd.f32 %v262_v45, %v261_v44  ;;  %v264_v50 = vsel %vm224_vm0, %v258_v47, 0.0  ;;  %s575_s8 = scalar_lea.vmem %s574_s7, 64  ;;  %p576_p7 = scmp.lt.s32.totalorder %s860_s26, %s574_s7 }
  0x62   : > { %v236_v15 = vmul.f32 1.442695, %v232_v11  ;;  %v238_v16 = vmul.f32 1.442695, %v233_v12  ;;  %v240_v17 = vmul.f32 1.442695, %v234_v13  ;;  %p572_p4 = pneg %p571_p11  ;;  %p577_p10 = scmp.lt.s32.totalorder %s575_s8, %s569_s25 }
  0x63   : > { %v242_v18 = vmul.f32 1.442695, %v235_v14  ;;  %v265_v54 = vadd.f32 %v264_v50, %v263_v49 }
  0x64   : > { %497 = vpow2.f32 %v236_v15  ;;  %p578_p12 = por %p577_p10, %p576_p7 }
  0x65   : > { %499 = vpow2.f32 %v238_v16 }
  0x66   : > { %501 = vpow2.f32 %v240_v17  ;;  %p579_p9 = pnand %p578_p12, %p572_p4 }
  0x67   : > { %503 = vpow2.f32 %v242_v18 }
  0x6e   : > { %v498_v20 = vpop.eup %497 }
  0x6f   : > { %v500_v21 = vpop.eup %499  ;;  %v244_v22 = vsel %vm224_vm0, %v498_v20, 0.0  ;;  %v266_v28 = vsel %vm251_vm1, %v498_v20, 0.0 }
  0x70   : > { %v502_v23 = vpop.eup %501  ;;  %v245_v24 = vsel %vm224_vm0, %v500_v21, 0.0  ;;  %v267_v29 = vsel %vm252_vm2, %v500_v21, 0.0  ;;  %v270_v34 = vsel %vm224_vm0, %v266_v28, 0.0 }
  0x71   : > { %v504_v25 = vpop.eup %503  ;;  %v246_v26 = vadd.f32 %v245_v24, %v244_v22  ;;  %v247_v27 = vsel %vm224_vm0, %v502_v23, 0.0  ;;  %v271_v35 = vsel %vm224_vm0, %v267_v29, 0.0  ;;  %v268_v37 = vsel %vm253_vm3, %v502_v23, 0.0 }
  0x72   : > { %v249_v30 = vsel %vm224_vm0, %v504_v25, 0.0  ;;  %v272_v40 = vadd.f32 %v271_v35, %v270_v34  ;;  %v273_v42 = vsel %vm224_vm0, %v268_v37, 0.0  ;;  %v269_v43 = vsel %vm254_vm4, %v504_v25, 0.0 }
  0x73   : > { %v248_v31 = vadd.f32 %v247_v27, %v246_v26  ;;  %v275_v48 = vsel %vm224_vm0, %v269_v43, 0.0 }
  0x74   : > { %v274_v46 = vadd.f32 %v273_v42, %v272_v40 }
  0x75   : > { %v250_v36 = vadd.f32 %v249_v30, %v248_v31 }
  0x76   : > { %v276_v51 = vadd.f32 %v275_v48, %v274_v46 }
  0x77   : > { %505 = vlog2.f32 %v250_v36 }
  0x78   : > { %507 = vrcp.f32 %v250_v36 }
  0x81   : > { %v506_v52 = vpop.eup %505 }
  0x82   : > { %v508_v53 = vpop.eup %507  ;;  %v278_v55 = vmul.f32 0.6931472, %v506_v52 }
  0x83   : > { %v283_v56 = vmul.f32 %v508_v53, %v276_v51 }
  0x84   : > { %v279_v57 = vadd.f32 %v278_v55, %v231_v10 }
  0x85   : > { %v284_v58 = vsub.f32 1.0, %v283_v56 }
  0x86   : > { %v280_v59 = vsub.f32 %v279_v57, %v265_v54 }
  0x87   : > { %v285_v60 = vmax.f32 %v284_v58, 0.0 }
  0x88   : > { %v281_v61 = vmax.f32 %v280_v59, 0.0 }
  0x89   : > { %v286_v62 = vmul.f32 %v285_v60, %v285_v60 }
  0x8b   : > { %v287_v63 = vmul.f32 0.25, %v286_v62 }
  0x8d   : > { %v288_v0 = vmul.f32 %v287_v63, %v281_v61 }
  0x8f   : > { %289 = vst [vmem:[%s218_s21] sm:$0x3] %v288_v0 }
  0x90   : > { %582 = shalt.err (!%p579_p9)
}
  0x91   : > { %s583_s16 = scalar_lea.hbm %s865_s29, 32  ;;  %s587_s4 = scalar_lea.hbm %s914_s2, 64 }
  0x92   : > { %p584_p1 = scmp.ne.s32.totalorder %s865_s29, %s583_s16  ;;  %p588_p5 = scmp.lt.u32.totalorder %s865_s29, %s914_s2 }
  0x93   : > { %p589_p13 = scmp.lt.u32.totalorder %s587_s4, %s583_s16  ;;  %p591_p8 = scmp.lt.u32.totalorder %s583_s16, %s865_s29 }
  0x94   : > { %p585_p6 = pnand %p584_p1, %p926_p0 }
  0x95   : > { %p590_p3 = por %p589_p13, %p588_p5 }
  0x96   : > { %p586_p2 = pneg %p585_p6 }
  0x97   : > { %p592_p11 = por %p591_p8, %p590_p3 }
  0x99   : > { %p593_p4 = pnand %p592_p11, %p586_p2 }
  0x9b   : > { %596 = shalt.err (!%p593_p4)
}
  0x9c   : > { %432 = dma.vmem_to_hbm [thread:$0]  (%p926_p0), %s860_s26, 32, %s865_s29, %s291_s3  }
  0x9d PF: > { %s317_s15 = sand.u32 1, %s635_s9   ;;  %p927_p7 = scmp.ne.s32.totalorder %s920_s24, 0 }
  0x9e   : > { %p928_p10 = scmp.ge.s32.totalorder %s655_s14, 2  ;;  %s318_s19 = scalar_lea.sflag [#allocation4], %s317_s15 }
  0xa0   : > { %p442_p12 = pnand %p928_p10, %p927_p7 }
  0xa2   : > { %630 = dma.done.wait (!%p442_p12), %s318_s19, 32  }
  0xa3   : > { %632 = vsyncadd (!%p442_p12), %s318_s19, 4294967264  ;;  %s21_s14 = sadd.s32 1, %s655_s14   ;;  %s929_s9 = smov %s639_s10 }
  0xa4   : > { %p18_p9 = scmp.ge.s32.totalorder %s21_s14, 4   ;;  %s930_s10 = smov %s643_s11 }
  0xa5   : > { %s931_s11 = smov %s733_s23  ;;  %s932_s12 = smov %s651_s13 }
  0xa6   : > { %s933_s13 = smov %s935_s17  ;;  %20 = sbr.rel (!%p18_p9) target bundleno = 8 (0x8), region = 86 }
  0xad   :  { %323 = vsyncpa [#allocation3], 1 }
  0xae   :  { %325 = vsyncpa [#allocation3 + $0x1], 1 }
  0xaf   :  { %326 = vsyncpa [#allocation6], 1 }
  0xb0   :  { %328 = vsyncpa [#allocation6 + $0x1], 1 }
  0xb1   :  { %329 = vsyncpa [#allocation4], 1 }
  0xb2   :  { %331 = vsyncpa [#allocation4 + $0x1], 1 }

</bundles_post_ra>
